<compile_context>
chip_gen: v7x
topology: tpu7x:2x2x1
jax: 0.10.0
libtpu: 0.0.40
codegen_flags: <defaults>
</compile_context>

<pallas_src>
import functools

import jax
import jax.numpy as jnp
from jax import lax
from jax.experimental import pallas as pl
from jax.experimental.pallas import tpu as pltpu


def _nll_partial_sum_kernel(logp_ref, y_ref, sum_ref, *, ignore_index, n_rows):
    """One grid step: partial sum of logp[row, y[row]] over valid rows."""
    i = pl.program_id(0)

    logp = logp_ref[...]                                # (TN, V) native dtype
    y = y_ref[...]                                      # (TN, 1) int32
    tn, vp = logp.shape

    # Gather the target log-prob along the lane (vocab) axis with a select
    # (never a multiply): -inf / garbage lanes can't make NaN.  jnp.zeros_like
    # keeps the hot path in the native dtype (no bf16->f32 promotion).  At most
    # one lane survives per row, so the native-dtype row-sum is exact; cast
    # only the reduced (TN, 1) result to f32.
    col = lax.broadcasted_iota(jnp.int32, (tn, vp), 1)
    picked = jnp.sum(jnp.where(col == y, logp, jnp.zeros_like(logp)),
                     axis=-1, keepdims=True).astype(jnp.float32)    # (TN, 1)

    # Valid rows: not ignore_index AND inside the real (unpadded) row range.
    row = lax.broadcasted_iota(jnp.int32, (tn, 1), 0) + i * tn
    valid = jnp.logical_and(y != ignore_index, row < n_rows)        # (TN, 1)

    # Ragged-edge rows may hold garbage logp -> select, don't multiply.
    part_sum = jnp.sum(jnp.where(valid, picked, 0.0),
                       axis=0, keepdims=True)                       # (1, 1)
    sum_ref[...] = part_sum.reshape(1, 1, 1)


def _sublane_multiple(itemsize):
    # Second-minor packing granule: f32 -> 8, bf16/f16 -> 16, int8/fp8 -> 32.
    return max(8, 32 // max(1, int(itemsize)))


def _vmem_budget_bytes():
    """Generation-aware (in-kernel working-set budget, compiler vmem limit)."""
    try:
        cap = pltpu.get_tpu_info().vmem_capacity_bytes
    except Exception:
        cap = 64 << 20              # be conservative if the query fails
    if cap >= (96 << 20):           # v5e / v6e: 128 MiB physical VMEM
        return 72 << 20, 88 << 20
    # v7x: 64 MiB physical VMEM per TensorCore -> stay well under it.
    return 36 << 20, 44 << 20


def mle_criterion_loss(vocab_logprob,
                       decoder_input_ids,
                       *,
                       ignore_index,
                       use_bos_token=False,
                       use_eos_token=False,
                       row_tile=None):
    """JAX/Pallas equivalent of MLECriterion.forward.

    vocab_logprob: (B, T, V) float log-probabilities (f32 or bf16).
    decoder_input_ids: (B, T) int token ids (T includes BOS if use_bos_token).
    Returns scalar mean NLL over tokens != ignore_index.
    """
    y = decoder_input_ids
    if use_bos_token:
        y = y[:, 1:]
    if use_eos_token:
        vocab_logprob = vocab_logprob[:, :-1, :]

    b, t, v = vocab_logprob.shape
    n = b * t
    # Stream in native dtype; reshape is layout-only (no extra HBM pass).
    logp = vocab_logprob.reshape(n, v)
    itemsize = logp.dtype.itemsize
    sublane = _sublane_multiple(itemsize)

    work_budget, vmem_limit = _vmem_budget_bytes()

    if row_tile is None:
        # Approximate per-element VMEM footprint of one grid step:
        #   2x double-buffered logp block (native) + int32 lane iota
        #   + select result (native) + compare mask (~1 B).
        bytes_per_elem = 3 * itemsize + 5
        rows = work_budget // max(1, v * bytes_per_elem)
        # Keep >= ~8 grid steps when possible so v7x can shard across both TCs.
        if n >= 8 * sublane:
            rows = min(rows, n // 8)
        rows = (rows // sublane) * sublane
        rows = max(sublane, rows)
        rows = min(rows, -(-n // sublane) * sublane)   # never exceed ceil(n)
        row_tile = int(rows)
    else:
        # Round any user-provided tile up to the dtype's sublane granule.
        row_tile = int(max(sublane, -(-row_tile // sublane) * sublane))

    grid_n = pl.cdiv(n, row_tile)

    # Targets are tiny: pad rows to the grid extent with ignore_index so the
    # ragged edge tile masks itself.  (The big logp slab is NOT padded.)
    y_flat = y.reshape(n).astype(jnp.int32)
    y2 = y_flat.reshape(n, 1)
    row_pad = grid_n * row_tile - n
    if row_pad:
        y2 = jnp.pad(y2, ((0, row_pad), (0, 0)), constant_values=ignore_index)

    kernel = functools.partial(_nll_partial_sum_kernel,
                               ignore_index=ignore_index, n_rows=n)

    part_sum = pl.pallas_call(
        kernel,
        out_shape=jax.ShapeDtypeStruct((grid_n, 1, 1), jnp.float32),
        grid_spec=pltpu.PrefetchScalarGridSpec(
            num_scalar_prefetch=0,
            grid=(grid_n,),
            in_specs=[
                pl.BlockSpec((row_tile, v), lambda i: (i, 0)),
                pl.BlockSpec((row_tile, 1), lambda i: (i, 0)),
            ],
            out_specs=pl.BlockSpec((1, 1, 1), lambda i: (i, 0, 0)),
        ),
        compiler_params=pltpu.CompilerParams(
            dimension_semantics=("parallel",),
            vmem_limit_bytes=int(vmem_limit)),
    )(logp, y2)

    total_sum = jnp.sum(part_sum)
    # Count of non-ignored tokens computed on the tiny target vector (wrapper).
    total_cnt = jnp.sum((y_flat != ignore_index).astype(jnp.float32))
    # Mean over non-ignored tokens; negation folded in here (once).
    # Note: returns 0.0 (not NaN) if every token is ignore_index — deliberate
    # divergence from torch.nn.functional.nll_loss.
    return -total_sum / jnp.maximum(total_cnt, 1.0)


def _reference_loss(vocab_logprob, decoder_input_ids, *, ignore_index,
                    use_bos_token, use_eos_token):
    y = decoder_input_ids
    if use_bos_token:
        y = y[:, 1:]
    if use_eos_token:
        vocab_logprob = vocab_logprob[:, :-1, :]
    b, t, v = vocab_logprob.shape
    logp = vocab_logprob.reshape(-1, v).astype(jnp.float32)
    yf = y.reshape(-1)
    picked = jnp.take_along_axis(logp, yf[:, None], axis=-1)[:, 0]
    valid = (yf != ignore_index).astype(jnp.float32)
    return jnp.sum(-picked * valid) / jnp.maximum(jnp.sum(valid), 1.0)


if __name__ == "__main__":
    key = jax.random.PRNGKey(0)
    k_logits, k_tgt, k_mask = jax.random.split(key, 3)

    # Small shapes: batch=2, seq=9 (BOS + 8 targets), vocab=128.
    B, T, V = 2, 9, 128
    IGNORE_INDEX = 0          # pad_token_id

    logits = jax.random.normal(k_logits, (B, T, V), dtype=jnp.float32)
    vocab_logprob = jax.nn.log_softmax(logits, axis=-1)

    decoder_input_ids = jax.random.randint(k_tgt, (B, T), 1, V, dtype=jnp.int32)
    # Sprinkle a few pad tokens (ignore_index) into the targets.
    pad_mask = jax.random.bernoulli(k_mask, 0.2, (B, T))
    decoder_input_ids = jnp.where(pad_mask, IGNORE_INDEX, decoder_input_ids)

    # 1) f32 path with BOS/EOS trimming (matches the module's default options).
    loss = mle_criterion_loss(
        vocab_logprob, decoder_input_ids,
        ignore_index=IGNORE_INDEX, use_bos_token=True, use_eos_token=True)
    loss = jax.block_until_ready(loss)
    ref = _reference_loss(
        vocab_logprob, decoder_input_ids,
        ignore_index=IGNORE_INDEX, use_bos_token=True, use_eos_token=True)
    assert jnp.allclose(loss, ref, rtol=1e-5, atol=1e-5), (loss, ref)

    # 2) bf16 streaming path (native-dtype DMA and select, f32 reduction).
    loss_bf16 = mle_criterion_loss(
        vocab_logprob.astype(jnp.bfloat16), decoder_input_ids,
        ignore_index=IGNORE_INDEX, use_bos_token=True, use_eos_token=True)
    loss_bf16 = jax.block_until_ready(loss_bf16)
    assert jnp.allclose(loss_bf16, ref, rtol=2e-2, atol=2e-2), (loss_bf16, ref)

    # 3) Ragged-edge path: no trimming (n = 18), explicit row_tile=8 -> 3 grid
    #    steps with a partially-valid final tile.
    loss_ragged = mle_criterion_loss(
        vocab_logprob, decoder_input_ids,
        ignore_index=IGNORE_INDEX, use_bos_token=False, use_eos_token=False,
        row_tile=8)
    loss_ragged = jax.block_until_ready(loss_ragged)
    ref_ragged = _reference_loss(
        vocab_logprob, decoder_input_ids,
        ignore_index=IGNORE_INDEX, use_bos_token=False, use_eos_token=False)
    assert jnp.allclose(loss_ragged, ref_ragged, rtol=1e-5, atol=1e-5), (
        loss_ragged, ref_ragged)

    print("KERNEL_OK")
</pallas_src>

<mosaic_0001>
module attributes {stable_mosaic.version = 11 : i64} {
  func.func @_nll_partial_sum_kernel(%arg0: i32, %arg1: memref<16x128xf32, #tpu.memory_space<vmem>>, %arg2: memref<16x1xi32, #tpu.memory_space<vmem>>, %arg3: memref<1x1x1xf32, #tpu.memory_space<vmem>>) attributes {dimension_semantics = [#tpu.dimension_semantics<parallel>], iteration_bounds = array<i64: 1>, scalar_prefetch = 0 : i64, scratch_operands = 0 : i64, tpu.core_type = #tpu.core_type<tc>, window_params = [{transform_indices = @transform_0, window_bounds = array<i64: 16, 128>}, {transform_indices = @transform_1, window_bounds = array<i64: 16, 1>}, {transform_indices = @transform_2, window_bounds = array<i64: 1, 1, 1>}]} {
    %c0 = arith.constant 0 : index
    %c0_0 = arith.constant 0 : index
    %0 = vector.load %arg1[%c0, %c0_0] : memref<16x128xf32, #tpu.memory_space<vmem>>, vector<16x128xf32>
    %c0_1 = arith.constant 0 : index
    %c0_2 = arith.constant 0 : index
    %1 = vector.load %arg2[%c0_1, %c0_2] : memref<16x1xi32, #tpu.memory_space<vmem>>, vector<16x1xi32>
    %2 = tpu.iota {dimensions = array<i32: 1>} : vector<16x128xi32>
    %3 = vector.broadcast %1 : vector<16x1xi32> to vector<16x128xi32>
    %4 = arith.cmpi eq, %2, %3 : vector<16x128xi32>
    %cst = arith.constant 0.000000e+00 : f32
    %5 = vector.broadcast %cst : f32 to vector<16x128xf32>
    %6 = arith.select %4, %0, %5 : vector<16x128xi1>, vector<16x128xf32>
    %cst_3 = arith.constant dense<0.000000e+00> : vector<16xf32>
    %7 = vector.multi_reduction <add>, %6, %cst_3 [1] : vector<16x128xf32> to vector<16xf32>
    %8 = vector.shape_cast %7 : vector<16xf32> to vector<16x1xf32>
    %9 = tpu.iota {dimensions = array<i32: 0>} : vector<16x1xi32>
    %c16_i32 = arith.constant 16 : i32
    %10 = arith.muli %arg0, %c16_i32 : i32
    %11 = vector.broadcast %10 : i32 to vector<16x1xi32>
    %12 = arith.addi %9, %11 : vector<16x1xi32>
    %c0_i32 = arith.constant 0 : i32
    %13 = vector.broadcast %c0_i32 : i32 to vector<16x1xi32>
    %14 = arith.cmpi ne, %1, %13 : vector<16x1xi32>
    %c16_i32_4 = arith.constant 16 : i32
    %15 = vector.broadcast %c16_i32_4 : i32 to vector<16x1xi32>
    %16 = arith.cmpi slt, %12, %15 : vector<16x1xi32>
    %17 = arith.andi %14, %16 : vector<16x1xi1>
    %cst_5 = arith.constant 0.000000e+00 : f32
    %18 = vector.broadcast %cst_5 : f32 to vector<16x1xf32>
    %19 = arith.select %17, %8, %18 : vector<16x1xi1>, vector<16x1xf32>
    %cst_6 = arith.constant dense<0.000000e+00> : vector<1xf32>
    %20 = vector.multi_reduction <add>, %19, %cst_6 [0] : vector<16x1xf32> to vector<1xf32>
    %21 = vector.shape_cast %20 : vector<1xf32> to vector<1x1xf32>
    %22 = vector.shape_cast %21 : vector<1x1xf32> to vector<1x1x1xf32>
    %c0_7 = arith.constant 0 : index
    %c0_8 = arith.constant 0 : index
    %c0_9 = arith.constant 0 : index
    %23 = vector.load %arg3[%c0_7, %c0_8, %c0_9] : memref<1x1x1xf32, #tpu.memory_space<vmem>>, vector<1x1x1xf32>
    tpu.vector_store %arg3[%c0_7, %c0_8, %c0_9], %22 {strides = array<i32>} : memref<1x1x1xf32, #tpu.memory_space<vmem>>, vector<1x1x1xf32>,
    return
  }
  func.func @transform_0(%arg0: i32) -> (i32, i32) {
    %c0_i32 = arith.constant 0 : i32
    %c0_i32_0 = arith.constant 0 : i32
    return %arg0, %c0_i32 : i32, i32
  }
  func.func @transform_1(%arg0: i32) -> (i32, i32) {
    %c0_i32 = arith.constant 0 : i32
    %c0_i32_0 = arith.constant 0 : i32
    return %arg0, %c0_i32 : i32, i32
  }
  func.func @transform_2(%arg0: i32) -> (i32, i32, i32) {
    %c0_i32 = arith.constant 0 : i32
    %c0_i32_0 = arith.constant 0 : i32
    %c0_i32_1 = arith.constant 0 : i32
    return %arg0, %c0_i32, %c0_i32_0 : i32, i32, i32
  }
}

</mosaic_0001>

<bundles_post_ra>
// kernel: tpu_custom_call.1
= control target key start
LH: loop header
LB: loop body
LE: loop exit
PB: predicated region body
PF: predicated region fallthrough
CT: control target
= control target key end

     0   :  { %s141_s0 = inlined_call_operand.vmem [shape: f32[16,128], index: 0, kind: input, shape index: {}]   ;;  %s142_s1 = inlined_call_operand.vmem [shape: s32[16,1], index: 1, kind: input, shape index: {}]   ;;  %s143_s2 = inlined_call_operand.hbm [shape: f32[1,1,1], index: 2, kind: output, shape index: {}]  }
   0x1   :  { %v14_v0 = vld [vmem:[%s142_s1] sm:$0xff] }
   0x2   :  { %7 = vsyncpa [#allocation3], 0  ;;  %v100_v1 = vmov 0   ;;  %v15_v2 = vld [vmem:[%s142_s1 + $0x8] sm:$0xff]  ;;  %v16_v3 = vlaneseq  ;;  %v12_v5 = vld [vmem:[%s141_s0] sm:$0xff]  ;;  %vm39_vm2 = vcmp.ne.s32.totalorder %v14_v0, 0 }
   0x3   :  { %75 = vset.pattern.permute.xlu0 %v100_v1  ;;  %v13_v8 = vld [vmem:[%s141_s0 + $0x8] sm:$0xff]  ;;  %vm40_vm3 = vcmp.ne.s32.totalorder %v15_v2, 0  ;;  %vm47_vm4 = vcmask 7168   ;;  %s101_s1 = smov [#allocation2]   ;;  %vm57_vm5 = vcmask 0  }
   0x4   :  { %19 = vperm.xlu0 %75, %v14_v0   ;;  %v17_v4 = vand.u32 127, %v16_v3  ;;  %s65_s0 = sshll.u32 %s101_s1, 4  ;;  %s66_s0 = int_to_ptr.vmem [resolvable:$true] %s65_s0 }
   0x5   :  { %s76_s17 = scalar_lea.vmem %s66_s0, 16  ;;  %s80_s18 = scalar_lea.vmem %s66_s0, 32 }
   0x6   :  { %p77_p0 = scmp.ne.s32.totalorder %s66_s0, %s76_s17  ;;  %p81_p1 = scmp.lt.s32.totalorder %s66_s0, %s66_s0 }
   0x7   :  { %p82_p2 = scmp.lt.s32.totalorder %s80_s18, %s76_s17 }
   0x8   :  { %22 = vperm.xlu0 %75, %v15_v2  }
   0x9   :  { %p83_p3 = por %p82_p2, %p81_p1 }
   0xb   :  { %p84_p4 = pnand %p83_p3, %p77_p0 }
  0x83   :  { %v20_v6 = vpop.permute.xlu0 %19 }
  0x84   :  { %vm24_vm0 = vcmp.eq.s32.totalorder %v17_v4, %v20_v6 }
  0x85   :  { %v26_v7 = vsel %vm24_vm0, %v12_v5, 0.0 }
  0x86   :  { %28 = vadd.xlane.f32.xlu1 %v26_v7 }
  0x87   :  { %v23_v9 = vpop.permute.xlu0 %22 }
  0x88   :  { %vm25_vm1 = vcmp.eq.s32.totalorder %v17_v4, %v23_v9 }
  0x89   :  { %v27_v10 = vsel %vm25_vm1, %v13_v8, 0.0 }
  0x8a   :  { %30 = vadd.xlane.f32.xlu1 %v27_v10 }
 0x113   :  { %v29_v11 = vpop.xlane.xlu1 %28 }
 0x114   :  { %v45_v12 = vsel %vm39_vm2, %v29_v11, 0.0 }
 0x115   :  { %v48_v15 = vsel %vm47_vm4, %v45_v12, 0.0 }
 0x117   :  { %v31_v13 = vpop.xlane.xlu1 %30 }
 0x118   :  { %v46_v14 = vsel %vm40_vm3, %v31_v13, 0.0 }
 0x119   :  { %v49_v16 = vsel %vm47_vm4, %v46_v14, 0.0 }
 0x11a   :  { %v50_v17 = vadd.f32 %v49_v16, %v48_v15 }
 0x11c   :  { %v51_v18 = vrot.slane %v50_v17, 4 }
 0x11e   :  { %v52_v19 = vadd.f32 %v51_v18, %v50_v17 }
 0x120   :  { %v53_v20 = vrot.slane %v52_v19, 2 }
 0x122   :  { %v54_v21 = vadd.f32 %v53_v20, %v52_v19 }
 0x124   :  { %v55_v22 = vrot.slane %v54_v21, 1 }
 0x126   :  { %v56_v23 = vadd.f32 %v55_v22, %v54_v21 }
 0x128   :  { %58 = vst.msk [vmem:[#allocation2] sm:$0x1] %vm57_vm5, %v56_v23 }
 0x129   :  { %87 = shalt.err (!%p84_p4)
}
 0x12a   :  { %s88_s21 = scalar_lea.hbm %s143_s2, 16 }
 0x12b   :  { %p89_p5 = scmp.ne.s32.totalorder %s143_s2, %s88_s21  ;;  %p92_p6 = scmp.lt.u32.totalorder %s88_s21, %s143_s2 }
 0x12d   :  { %p94_p7 = pnand %p92_p6, %p89_p5 }
 0x12f   :  { %97 = shalt.err (!%p94_p7)
}
 0x130   :  { %68 = dma.vmem_to_hbm [thread:$0]  %s66_s0, 16, %s143_s2, [#allocation3]  }
 0x131   :  { %98 = dma.done.wait [#allocation3], 16  }
 0x132   :  { %99 = vsyncadd [#allocation3], 4294967280 }
 0x133   :  { %72 = vsyncpa [#allocation3], 1 }

</bundles_post_ra>
